<compile_context>
chip_gen: v5e
topology: v5e:2x2
jax: 0.10.0
libtpu: 0.0.40
codegen_flags: <defaults>
</compile_context>

<pallas_src>
import jax
import jax.numpy as jnp
from jax import lax
from jax.experimental import pallas as pl
from jax.experimental.pallas import tpu as pltpu


def _retention_kernel(q_ref, k_ref, v_ref, om_ref, o_ref, invl_ref, dm_ref):
    # Block views for the current (head-block, batch) grid point:
    #   q_ref:  (HB, S1, D1)   k_ref: (HB, S2, D1)   v_ref: (HB, S2, D2)
    #   om_ref: (HB, S1, S2)   o_ref: (HB, S1, D2)
    # Scratch (persists across the inner batch axis):
    #   invl_ref: (HB, S1, 1)  f32   -- 1 / L rows
    #   dm_ref:   (HB, S1, S2) f32   -- causal decay matrix gamma^(i-j)
    b = pl.program_id(1)
    HB, S1, S2 = om_ref.shape

    # Per-head-block precompute: done once (b == 0) and reused for every batch
    # element while the omask block itself also stays VMEM-resident.
    @pl.when(b == 0)
    def _():
        om = om_ref[...].astype(jnp.float32)
        L = jnp.sum(om, axis=-1, keepdims=True)                # (HB, S1, 1)
        invl_ref[...] = 1.0 / L
        # gamma_h = omask[0, h, 1, 0]
        gamma = om[:, 1:2, 0:1]                                # (HB, 1, 1)
        log_g = jnp.log(jnp.maximum(gamma, 1e-30))             # assumes gamma > 0
        ii = lax.broadcasted_iota(jnp.int32, (HB, S1, S2), 1)
        jj = lax.broadcasted_iota(jnp.int32, (HB, S1, S2), 2)
        diff = (ii - jj).astype(jnp.float32)
        pw = jnp.exp(jnp.maximum(diff, 0.0) * log_g)           # gamma^(i-j)
        dm_ref[...] = jnp.where(ii >= jj, pw, 0.0)

    q = q_ref[...]
    k = k_ref[...]
    v = v_ref[...]

    # Fold the q / L row normalisation into q (native dtype, MXU-friendly).
    qL = q * invl_ref[...].astype(q.dtype)                     # (HB, S1, D1)

    # scores[h, i, j] = qL[h, i, :] . k[h, j, :]  (contract last dims; no k.T)
    scores = lax.dot_general(
        qL, k,
        dimension_numbers=(((2,), (2,)), ((0,), (0,))),
        preferred_element_type=jnp.float32)                    # (HB, S1, S2) f32

    # P_i = |sum_j gamma^(i-j) * scores[i, j]|, clamped to >= 1
    # (== qL . discounted_cumsum_left(k, gamma), re-associated)
    p = jnp.sum(scores * dm_ref[...], axis=-1, keepdims=True)  # (HB, S1, 1)
    inv_p = 1.0 / jnp.maximum(jnp.abs(p), 1.0)

    # Retention: ((qL k^T) * omask) @ v with f32 accumulation.
    w = scores * om_ref[...].astype(jnp.float32)               # (HB, S1, S2)
    out = lax.dot_general(
        w.astype(v.dtype), v,
        dimension_numbers=(((2,), (1,)), ((0,), (0,))),
        preferred_element_type=jnp.float32)                    # (HB, S1, D2) f32

    o_ref[...] = (out * inv_p).astype(o_ref.dtype)


def parallel_retention(q, k, v, omask, heads_per_block=None):
    B, H, S1, D1 = q.shape
    S2 = k.shape[2]
    D2 = v.shape[3]
    assert k.shape == (B, H, S2, D1)
    assert v.shape == (B, H, S2, D2)
    assert omask.shape == (1, H, S1, S2)

    if heads_per_block is None:
        # Small-shape regime: batch all heads into one block per batch element.
        # For long-context shapes this (and an S1/S2 tiling axis) would be
        # sized against the per-chip VMEM budget instead.
        heads_per_block = H
    HB = heads_per_block
    assert H % HB == 0
    n_hb = H // HB

    # Outer axis: head-block ("parallel", shardable across TensorCores).
    # Inner axis: batch ("arbitrary" -> strictly sequential) so the omask block
    # (index depends only on hb) is fetched once per head-block and the
    # pl.when(b == 0) precompute in scratch is valid for every later b.
    grid = (n_hb, B)

    return pl.pallas_call(
        _retention_kernel,
        out_shape=jax.ShapeDtypeStruct((B, H, S1, D2), q.dtype),
        grid_spec=pltpu.PrefetchScalarGridSpec(
            num_scalar_prefetch=0,
            grid=grid,
            in_specs=[
                pl.BlockSpec((None, HB, S1, D1), lambda hb, b: (b, hb, 0, 0)),
                pl.BlockSpec((None, HB, S2, D1), lambda hb, b: (b, hb, 0, 0)),
                pl.BlockSpec((None, HB, S2, D2), lambda hb, b: (b, hb, 0, 0)),
                # omask[0] only; block index constant in b => no re-DMA across B.
                pl.BlockSpec((None, HB, S1, S2), lambda hb, b: (0, hb, 0, 0)),
            ],
            out_specs=pl.BlockSpec((None, HB, S1, D2), lambda hb, b: (b, hb, 0, 0)),
            scratch_shapes=[
                pltpu.VMEM((HB, S1, 1), jnp.float32),   # 1 / L rows
                pltpu.VMEM((HB, S1, S2), jnp.float32),  # gamma^(i-j) decay matrix
            ],
        ),
        compiler_params=pltpu.CompilerParams(
            dimension_semantics=("parallel", "arbitrary"),
        ),
    )(q, k, v, omask)


# ----------------------------- pure-JAX reference -----------------------------

def _discounted_cumsum_seq(x, gamma):
    # x: [B, H, S, D], gamma: [H];  y_s = x_s + gamma * y_{s-1}
    xt = jnp.moveaxis(x, 2, 0)                                 # [S, B, H, D]
    g = gamma[None, :, None]

    def step(carry, xs):
        y = xs + g * carry
        return y, y

    _, ys = lax.scan(step, jnp.zeros_like(xt[0]), xt)
    return jnp.moveaxis(ys, 0, 2)                              # [B, H, S, D]


def _reference(q, k, v, omask):
    """Pure-JAX port of ParallelRetention_fast2.forward (forward2 path)."""
    f32 = jnp.float32
    gamma = omask[0, :, 1, 0].astype(f32)                      # [H]
    L = jnp.sum(omask, axis=-1, keepdims=True).astype(f32)     # [1, H, S1, 1]
    qL = q.astype(f32) / L
    Tbf = _discounted_cumsum_seq(k.astype(f32), gamma)         # [B, H, S2, D1]
    P = jnp.sum(qL * Tbf, axis=-1, keepdims=True)              # [B, H, S1, 1]
    P = jnp.maximum(jnp.abs(P), 1.0)
    O = jnp.einsum("bhia,hij,bhja,bhjc->bhic",
                   qL, omask[0].astype(f32), k.astype(f32), v.astype(f32),
                   precision=lax.Precision.HIGHEST)
    return (O / P).astype(q.dtype)


if __name__ == "__main__":
    B, H, S1, S2, D1, D2 = 2, 4, 8, 8, 32, 32

    key = jax.random.PRNGKey(0)
    kq, kk, kv, kg = jax.random.split(key, 4)
    q = jax.random.normal(kq, (B, H, S1, D1), dtype=jnp.float32)
    k = jax.random.normal(kk, (B, H, S2, D1), dtype=jnp.float32)
    v = jax.random.normal(kv, (B, H, S2, D2), dtype=jnp.float32)

    # Causal per-head decay mask: omask[0, h, i, j] = gamma_h^(i-j) for j <= i.
    gam = jax.random.uniform(kg, (H,), dtype=jnp.float32, minval=0.2, maxval=0.95)
    ii = jnp.arange(S1, dtype=jnp.float32)[:, None]
    jj = jnp.arange(S2, dtype=jnp.float32)[None, :]
    diff = ii - jj
    decay = jnp.where(diff >= 0, gam[:, None, None] ** diff[None, :, :], 0.0)
    omask = decay[None].astype(jnp.float32)                    # [1, H, S1, S2]

    out = jax.block_until_ready(parallel_retention(q, k, v, omask))
    ref = _reference(q, k, v, omask)

    assert out.shape == (B, H, S1, D2)
    assert jnp.allclose(out, ref, atol=1e-3, rtol=1e-3), (
        f"mismatch vs reference, max abs diff = {jnp.max(jnp.abs(out - ref))}")

    print("KERNEL_OK")
</pallas_src>

<mosaic_0001>
module attributes {stable_mosaic.version = 11 : i64} {
  func.func @_retention_kernel(%arg0: i32, %arg1: i32, %arg2: memref<1x4x8x32xf32, #tpu.memory_space<vmem>>, %arg3: memref<1x4x8x32xf32, #tpu.memory_space<vmem>>, %arg4: memref<1x4x8x32xf32, #tpu.memory_space<vmem>>, %arg5: memref<1x4x8x8xf32, #tpu.memory_space<vmem>>, %arg6: memref<1x4x8x32xf32, #tpu.memory_space<vmem>>, %arg7: memref<4x8x1xf32, #tpu.memory_space<vmem>>, %arg8: memref<4x8x8xf32, #tpu.memory_space<vmem>>) attributes {dimension_semantics = [#tpu.dimension_semantics<parallel>, #tpu.dimension_semantics<arbitrary>], iteration_bounds = array<i64: 1, 2>, scalar_prefetch = 0 : i64, scratch_operands = 2 : i64, tpu.core_type = #tpu.core_type<tc>, window_params = [{transform_indices = @transform_0, window_bounds = array<i64: 1, 4, 8, 32>}, {transform_indices = @transform_1, window_bounds = array<i64: 1, 4, 8, 32>}, {transform_indices = @transform_2, window_bounds = array<i64: 1, 4, 8, 32>}, {transform_indices = @transform_3, window_bounds = array<i64: 1, 4, 8, 8>}, {transform_indices = @transform_4, window_bounds = array<i64: 1, 4, 8, 32>}]} {
    %c0_i32 = arith.constant 0 : i32
    %0 = arith.cmpi eq, %arg1, %c0_i32 : i32
    %1 = arith.extui %0 : i1 to i32
    %c0_i32_0 = arith.constant 0 : i32
    %2 = arith.cmpi ne, %1, %c0_i32_0 : i32
    scf.if %2 {
      %c0_30 = arith.constant 0 : index
      %c0_31 = arith.constant 0 : index
      %c0_32 = arith.constant 0 : index
      %c0_33 = arith.constant 0 : index
      %31 = vector.load %arg5[%c0_30, %c0_31, %c0_32, %c0_33] : memref<1x4x8x8xf32, #tpu.memory_space<vmem>>, vector<1x4x8x8xf32>
      %32 = vector.shape_cast %31 : vector<1x4x8x8xf32> to vector<4x8x8xf32>
      %cst_34 = arith.constant dense<0.000000e+00> : vector<4x8xf32>
      %33 = vector.multi_reduction <add>, %32, %cst_34 [2] : vector<4x8x8xf32> to vector<4x8xf32>
      %34 = vector.shape_cast %33 : vector<4x8xf32> to vector<4x8x1xf32>
      %cst_35 = arith.constant 1.000000e+00 : f32
      %35 = vector.broadcast %cst_35 : f32 to vector<4x8x1xf32>
      %36 = arith.divf %35, %34 : vector<4x8x1xf32>
      %c0_36 = arith.constant 0 : index
      %c0_37 = arith.constant 0 : index
      %c0_38 = arith.constant 0 : index
      %37 = vector.load %arg7[%c0_36, %c0_37, %c0_38] : memref<4x8x1xf32, #tpu.memory_space<vmem>>, vector<4x8x1xf32>
      tpu.vector_store %arg7[%c0_36, %c0_37, %c0_38], %36 {strides = array<i32>} : memref<4x8x1xf32, #tpu.memory_space<vmem>>, vector<4x8x1xf32>,
      %38 = vector.extract_strided_slice %32 {offsets = [0, 1, 0], sizes = [4, 1, 1], strides = [1, 1, 1]} : vector<4x8x8xf32> to vector<4x1x1xf32>
      %cst_39 = arith.constant 1.000000e-30 : f32
      %39 = vector.broadcast %cst_39 : f32 to vector<4x1x1xf32>
      %40 = arith.maximumf %38, %39 : vector<4x1x1xf32>
      %41 = math.log %40 : vector<4x1x1xf32>
      %42 = tpu.iota {dimensions = array<i32: 1>} : vector<4x8x8xi32>
      %43 = tpu.iota {dimensions = array<i32: 2>} : vector<4x8x8xi32>
      %44 = arith.subi %42, %43 : vector<4x8x8xi32>
      %45 = arith.sitofp %44 : vector<4x8x8xi32> to vector<4x8x8xf32>
      %cst_40 = arith.constant 0.000000e+00 : f32
      %46 = vector.broadcast %cst_40 : f32 to vector<4x8x8xf32>
      %47 = arith.maximumf %45, %46 : vector<4x8x8xf32>
      %48 = vector.broadcast %41 : vector<4x1x1xf32> to vector<4x8x8xf32>
      %49 = arith.mulf %47, %48 : vector<4x8x8xf32>
      %50 = math.exp %49 : vector<4x8x8xf32>
      %51 = arith.cmpi sge, %42, %43 : vector<4x8x8xi32>
      %cst_41 = arith.constant 0.000000e+00 : f32
      %52 = vector.broadcast %cst_41 : f32 to vector<4x8x8xf32>
      %53 = arith.select %51, %50, %52 : vector<4x8x8xi1>, vector<4x8x8xf32>
      %c0_42 = arith.constant 0 : index
      %c0_43 = arith.constant 0 : index
      %c0_44 = arith.constant 0 : index
      %54 = vector.load %arg8[%c0_42, %c0_43, %c0_44] : memref<4x8x8xf32, #tpu.memory_space<vmem>>, vector<4x8x8xf32>
      tpu.vector_store %arg8[%c0_42, %c0_43, %c0_44], %53 {strides = array<i32>} : memref<4x8x8xf32, #tpu.memory_space<vmem>>, vector<4x8x8xf32>,
    } else {
    }
    %c0 = arith.constant 0 : index
    %c0_1 = arith.constant 0 : index
    %c0_2 = arith.constant 0 : index
    %c0_3 = arith.constant 0 : index
    %3 = vector.load %arg2[%c0, %c0_1, %c0_2, %c0_3] : memref<1x4x8x32xf32, #tpu.memory_space<vmem>>, vector<1x4x8x32xf32>
    %4 = vector.shape_cast %3 : vector<1x4x8x32xf32> to vector<4x8x32xf32>
    %c0_4 = arith.constant 0 : index
    %c0_5 = arith.constant 0 : index
    %c0_6 = arith.constant 0 : index
    %c0_7 = arith.constant 0 : index
    %5 = vector.load %arg3[%c0_4, %c0_5, %c0_6, %c0_7] : memref<1x4x8x32xf32, #tpu.memory_space<vmem>>, vector<1x4x8x32xf32>
    %6 = vector.shape_cast %5 : vector<1x4x8x32xf32> to vector<4x8x32xf32>
    %c0_8 = arith.constant 0 : index
    %c0_9 = arith.constant 0 : index
    %c0_10 = arith.constant 0 : index
    %c0_11 = arith.constant 0 : index
    %7 = vector.load %arg4[%c0_8, %c0_9, %c0_10, %c0_11] : memref<1x4x8x32xf32, #tpu.memory_space<vmem>>, vector<1x4x8x32xf32>
    %8 = vector.shape_cast %7 : vector<1x4x8x32xf32> to vector<4x8x32xf32>
    %c0_12 = arith.constant 0 : index
    %c0_13 = arith.constant 0 : index
    %c0_14 = arith.constant 0 : index
    %9 = vector.load %arg7[%c0_12, %c0_13, %c0_14] : memref<4x8x1xf32, #tpu.memory_space<vmem>>, vector<4x8x1xf32>
    %10 = vector.broadcast %9 : vector<4x8x1xf32> to vector<4x8x32xf32>
    %11 = arith.mulf %4, %10 : vector<4x8x32xf32>
    %cst = arith.constant dense<0.000000e+00> : vector<4x8x8xf32>
    %12 = tpu.matmul %11, %6, %cst {dimension_numbers = #tpu.dot_dimension_numbers<[2], [2], [1], [1], [0, 0, 0, 1, 1, 1], [0], [0]>} : vector<4x8x32xf32>, vector<4x8x32xf32>, vector<4x8x8xf32> -> vector<4x8x8xf32>
    %c0_15 = arith.constant 0 : index
    %c0_16 = arith.constant 0 : index
    %c0_17 = arith.constant 0 : index
    %13 = vector.load %arg8[%c0_15, %c0_16, %c0_17] : memref<4x8x8xf32, #tpu.memory_space<vmem>>, vector<4x8x8xf32>
    %14 = arith.mulf %12, %13 : vector<4x8x8xf32>
    %cst_18 = arith.constant dense<0.000000e+00> : vector<4x8xf32>
    %15 = vector.multi_reduction <add>, %14, %cst_18 [2] : vector<4x8x8xf32> to vector<4x8xf32>
    %16 = vector.shape_cast %15 : vector<4x8xf32> to vector<4x8x1xf32>
    %17 = math.absf %16 : vector<4x8x1xf32>
    %cst_19 = arith.constant 1.000000e+00 : f32
    %18 = vector.broadcast %cst_19 : f32 to vector<4x8x1xf32>
    %19 = arith.maximumf %17, %18 : vector<4x8x1xf32>
    %cst_20 = arith.constant 1.000000e+00 : f32
    %20 = vector.broadcast %cst_20 : f32 to vector<4x8x1xf32>
    %21 = arith.divf %20, %19 : vector<4x8x1xf32>
    %c0_21 = arith.constant 0 : index
    %c0_22 = arith.constant 0 : index
    %c0_23 = arith.constant 0 : index
    %c0_24 = arith.constant 0 : index
    %22 = vector.load %arg5[%c0_21, %c0_22, %c0_23, %c0_24] : memref<1x4x8x8xf32, #tpu.memory_space<vmem>>, vector<1x4x8x8xf32>
    %23 = vector.shape_cast %22 : vector<1x4x8x8xf32> to vector<4x8x8xf32>
    %24 = arith.mulf %12, %23 : vector<4x8x8xf32>
    %cst_25 = arith.constant dense<0.000000e+00> : vector<4x8x32xf32>
    %25 = tpu.matmul %24, %8, %cst_25 {dimension_numbers = #tpu.dot_dimension_numbers<[2], [1], [1], [2], [0, 0, 0, 1, 1, 2], [0], [0]>} : vector<4x8x8xf32>, vector<4x8x32xf32>, vector<4x8x32xf32> -> vector<4x8x32xf32>
    %26 = vector.broadcast %21 : vector<4x8x1xf32> to vector<4x8x32xf32>
    %27 = arith.mulf %25, %26 : vector<4x8x32xf32>
    %c0_26 = arith.constant 0 : index
    %c0_27 = arith.constant 0 : index
    %c0_28 = arith.constant 0 : index
    %c0_29 = arith.constant 0 : index
    %28 = vector.load %arg6[%c0_26, %c0_27, %c0_28, %c0_29] : memref<1x4x8x32xf32, #tpu.memory_space<vmem>>, vector<1x4x8x32xf32>
    %29 = vector.shape_cast %28 : vector<1x4x8x32xf32> to vector<4x8x32xf32>
    %30 = vector.shape_cast %27 : vector<4x8x32xf32> to vector<1x4x8x32xf32>
    tpu.vector_store %arg6[%c0_26, %c0_27, %c0_28, %c0_29], %30 {strides = array<i32>} : memref<1x4x8x32xf32, #tpu.memory_space<vmem>>, vector<1x4x8x32xf32>,
    return
  }
  func.func @transform_0(%arg0: i32, %arg1: i32) -> (i32, i32, i32, i32) {
    %c0_i32 = arith.constant 0 : i32
    %c0_i32_0 = arith.constant 0 : i32
    %c0_i32_1 = arith.constant 0 : i32
    return %arg1, %arg0, %c0_i32, %c0_i32_0 : i32, i32, i32, i32
  }
  func.func @transform_1(%arg0: i32, %arg1: i32) -> (i32, i32, i32, i32) {
    %c0_i32 = arith.constant 0 : i32
    %c0_i32_0 = arith.constant 0 : i32
    %c0_i32_1 = arith.constant 0 : i32
    return %arg1, %arg0, %c0_i32, %c0_i32_0 : i32, i32, i32, i32
  }
  func.func @transform_2(%arg0: i32, %arg1: i32) -> (i32, i32, i32, i32) {
    %c0_i32 = arith.constant 0 : i32
    %c0_i32_0 = arith.constant 0 : i32
    %c0_i32_1 = arith.constant 0 : i32
    return %arg1, %arg0, %c0_i32, %c0_i32_0 : i32, i32, i32, i32
  }
  func.func @transform_3(%arg0: i32, %arg1: i32) -> (i32, i32, i32, i32) {
    %c0_i32 = arith.constant 0 : i32
    %c0_i32_0 = arith.constant 0 : i32
    %c0_i32_1 = arith.constant 0 : i32
    %c0_i32_2 = arith.constant 0 : i32
    return %c0_i32, %arg0, %c0_i32_0, %c0_i32_1 : i32, i32, i32, i32
  }
  func.func @transform_4(%arg0: i32, %arg1: i32) -> (i32, i32, i32, i32) {
    %c0_i32 = arith.constant 0 : i32
    %c0_i32_0 = arith.constant 0 : i32
    %c0_i32_1 = arith.constant 0 : i32
    return %arg1, %arg0, %c0_i32, %c0_i32_0 : i32, i32, i32, i32
  }
}

</mosaic_0001>

<bundles_post_ra>
// kernel: tpu_custom_call.1
= control target key start
LH: loop header
LB: loop body
LE: loop exit
PB: predicated region body
PF: predicated region fallthrough
CT: control target
= control target key end

     0   :  { %s1677_s0 = inlined_call_operand.hbm [shape: f32[2,4,8,32], index: 0, kind: input, shape index: {}]   ;;  %s1678_s1 = inlined_call_operand.hbm [shape: f32[2,4,8,32], index: 1, kind: input, shape index: {}]   ;;  %s1679_s2 = inlined_call_operand.hbm [shape: f32[2,4,8,32], index: 2, kind: input, shape index: {}]   ;;  %s1680_s3 = inlined_call_operand.hbm [shape: f32[1,4,8,8], index: 3, kind: input, shape index: {}]   ;;  %s1681_s4 = inlined_call_operand.hbm [shape: f32[2,4,8,32], index: 4, kind: output, shape index: {}]  }
   0x1   :  { %1689 = sst [smem:[#allocation19_spill]] %s1677_s0 }
   0x2   :  { %1690 = sst [smem:[#allocation20_spill]] %s1678_s1 }
   0x3   :  { %1691 = sst [smem:[#allocation21_spill]] %s1680_s3 }
   0x4   :  { %9 = vsyncpa [#allocation5], 0 }
   0x5   :  { %11 = vsyncpa [#allocation5 + $0x1], 0 }
   0x6   :  { %12 = vsyncpa [#allocation8], 0 }
   0x7   :  { %14 = vsyncpa [#allocation8 + $0x1], 0 }
   0x8   :  { %15 = vsyncpa [#allocation11], 0 }
   0x9   :  { %16 = vsyncpa [#allocation6], 0 }
   0xa   :  { %18 = vsyncpa [#allocation6 + $0x1], 0  ;;  %s1424_s15 = smov 0   ;;  %s1426_s16 = smov 0  }
   0xb   :  { %s1428_s17 = smov 0   ;;  %s1430_s18 = smov 0  }
   0xc   :  { %s1432_s19 = smov 0   ;;  %s1434_s20 = smov 0  }
   0xd LB: > { %1692 = sst [smem:[#allocation17_spill]] %s1387_s19  ;;  %s33_s21 = sadd.s32 1, %s1387_s19  ;;  %s1391_s20 = sphi %s1434_s20, %s24_s20   ;;  %s1387_s19 = sphi %s1432_s19, %s1706_s19   ;;  %s1383_s18 = sphi %s1430_s18, %s1705_s18   ;;  %s1379_s17 = sphi %s1428_s17, %s1709_s17   ;;  %s1375_s16 = sphi %s1426_s16, %s1708_s16   ;;  %s1371_s15 = sphi %s1424_s15, %s1707_s15  }
   0xe   : > { %s45_s22 = sadd.s32 1, %s1379_s17  ;;  %p34_p0 = scmp.ge.s32.totalorder %s33_s21, 2 }
   0xf   : > { %p52_p1 = scmp.ne.s32.totalorder %s1379_s17, %s1375_s16  ;;  %p53_p2 = scmp.eq.s32.totalorder %s1391_s20, 0 }
  0x10   : > { %s1711_s21 = smov (%p34_p0, %s33_s21), 0  ;;  %p1013_p4 = scmp.ge.s32.totalorder %s1391_s20, 2 }
  0x11   : > { %1693 = sst [smem:[#allocation18_spill]] %s1711_s21  ;;  %p54_p3 = por %p53_p2, %p52_p1 }
  0x12   : > { %s40_s23 = ssub.s32 %s1387_s19, %s1711_s21  ;;  %p1090_p6 = scmp.lt.s32.totalorder %s1391_s20, 2 }
  0x13   : > { %p43_p5 = scmp.eq.s32.totalorder %s40_s23, 0  ;;  %s1682_s24 = sand.u32 1, %s1379_s17  }
  0x14   : > { %s1470_s25 = sshll.u32 %s1387_s19, 5  ;;  %s1477_s27 = sshll.u32 %s1682_s24, 5 }
  0x15   : > { %s1473_s26 = scalar_select %p43_p5, %s1379_s17, %s45_s22  }
  0x16   : > { %p1479_p7 = pnand %p1090_p6, %p54_p3  ;;  %s233_s29 = sand.u32 1, %s1391_s20  }
  0x17   : > { %s1695_s1 = sld [smem:[#allocation20_spill]]  ;;  %s237_s7 = scalar_lea.vmem [#allocation7], %s1477_s27 }
  0x18   : > { %s247_s8 = sshll.u32 %s237_s7, 4  ;;  %s1489_s10 = scalar_lea.sflag [#allocation8], %s233_s29  ;;  %s248_s8 = int_to_ptr.vmem [resolvable:$true] %s247_s8 }
  0x19   : > { %s1683_s11 = smov 128   ;;  %s1685_s12 = smov 8  }
  0x1a   : > { %s1498_s13 = sadd.s32 4294967295, %s1391_s20   ;;  %s1010_s14 = sadd.s32 4294967294, %s1391_s20  }
  0x1b   : > { %p58_p8 = scmp.ne.s32.totalorder %s1375_s16, %s1371_s15  ;;  %p59_p9 = scmp.eq.s32.totalorder %s1498_s13, 0 }
  0x1c   : > { %p166_p10 = scmp.eq.s32.totalorder %s1498_s13, 1  ;;  %p172_p11 = scmp.eq.s32.totalorder %s1010_s14, 1 }
  0x1d   : > { %s244_s6 = scalar_lea.hbm %s1695_s1, %s1470_s25  ;;  %p1011_p12 = scmp.ge.s32.totalorder %s1391_s20, 1 }
  0x1e   : > { %s245_s9 = sshll.u32 %s244_s6, 4  ;;  %p1508_p13 = por %p59_p9, %p58_p8  ;;  %s246_s9 = int_to_ptr.hbm [resolvable:$true] %s245_s9 }
  0x1f   : > { %1081 = dma.hbm_to_vmem [thread:$0]  (!%p1479_p7), %s246_s9, 512, %s248_s8, %s1489_s10, %s1683_s11, %s1683_s11, %s1685_s12  }
  0x20   : > { %p1515_p0 = por %p166_p10, %p52_p1  ;;  %p1519_p2 = por %p172_p11, %p58_p8 }
  0x21   : > { %p179_p3 = scmp.lt.s32.totalorder %s1391_s20, 3  ;;  %s1699_s3 = sld [smem:[#allocation21_spill]] }
  0x22   : > { %s1395_s8 = smov [#allocation10]   ;;  %s1701_s0 = sld [smem:[#allocation19_spill]] }
  0x23   : > { %p1527_p5 = pnand %p1011_p12, %p179_p3  ;;  %s195_s9 = sshll.u32 %s1395_s8, 4  ;;  %s196_s9 = int_to_ptr.vmem [resolvable:$true] %s195_s9 }
  0x24   : > { %s213_s11 = scalar_lea.vmem [#allocation4], %s1477_s27  ;;  %s1702_s1 = smov 8  }
  0x25   : > { %p1071_p1 = pneg %p1527_p5  ;;  %s223_s12 = sshll.u32 %s213_s11, 4  ;;  %s224_s12 = int_to_ptr.vmem [resolvable:$true] %s223_s12 }
  0x26   : > { %s1704_s21 = sand.u32 1, %s1379_s17  }
  0x27   : > { %s193_s6 = sshll.u32 %s1699_s3, 4  ;;  %p1072_p6 = pnand %p1071_p1, %p59_p9  ;;  %s194_s6 = int_to_ptr.hbm [resolvable:$true] %s193_s6 }
  0x28   : > { %s220_s5 = scalar_lea.hbm %s1701_s0, %s1470_s25  ;;  %s1703_s3 = smov 128  }
  0x29   : > { %s221_s24 = sshll.u32 %s220_s5, 4  ;;  %s210_s8 = scalar_lea.sflag [#allocation5], %s1704_s21  ;;  %s222_s24 = int_to_ptr.hbm [resolvable:$true] %s221_s24 }
  0x2a   : > { %1074 = dma.hbm_to_vmem [thread:$0]  (!%p1072_p6), %s194_s6, 512, %s196_s9, [#allocation11], %s1703_s3, %s1703_s3, %s1702_s1  }
  0x2b   : > { %1078 = dma.hbm_to_vmem [thread:$0]  (!%p1479_p7), %s222_s24, 512, %s224_s12, %s210_s8, %s1703_s3, %s1703_s3, %s1702_s1  }
  0x2c   : > { %s268_s0 = scalar_lea.hbm %s1679_s2, %s1470_s25  ;;  %s261_s5 = scalar_lea.vmem [#allocation9], %s1477_s27 }
  0x2d   : > { %s271_s19 = sshll.u32 %s261_s5, 4  ;;  %s269_s11 = sshll.u32 %s268_s0, 4  ;;  %s272_s19 = int_to_ptr.vmem [resolvable:$true] %s271_s19  ;;  %s270_s11 = int_to_ptr.hbm [resolvable:$true] %s269_s11 }
  0x2e   : > { %1084 = dma.hbm_to_vmem [thread:$0]  (!%p1479_p7), %s270_s11, 512, %s272_s19, %s1489_s10, %s1703_s3, %s1703_s3, %s1702_s1  }
  0x2f   : > { %283 = sbr.rel (%p1527_p5) target bundleno = 615 (0x267), region = 36  ;;  %s1564_s21 = sand.u32 (!%p1527_p5), 1, %s1375_s16  }
  0x30   : > { %s1024_s24 = sshll.u32 (!%p1527_p5), %s1564_s21, 5  ;;  %s286_s25 = scalar_lea.sflag (!%p1527_p5), [#allocation5], %s1564_s21 }
  0x31   : > { %s1568_s27 = scalar_lea.vmem (!%p1527_p5), [#allocation4], %s1024_s24 }
  0x34   : > { %1354 = dma.done.wait (%p1508_p13), %s286_s25, 512  }
  0x35   : > { %1356 = vsyncadd (%p1508_p13), %s286_s25, 4294966784  ;;  %s295_s0 = sand.u32 1, %s1498_s13   ;;  %s1575_s3 = scalar_lea.vmem [#allocation7], %s1024_s24 }
  0x36   : > { %s296_s1 = scalar_lea.sflag [#allocation8], %s295_s0 }
  0x37   : > { %1358 = dma.done.wait (%p1508_p13), %s296_s1, 1024  }
  0x38   : > { %1360 = vsyncadd (%p1508_p13), %s296_s1, 4294966272  ;;  %s1581_s19 = scalar_lea.vmem [#allocation9], %s1024_s24 }
  0x39   : > { %1362 = dma.done.wait (%p59_p9), [#allocation11], 512  }
  0x3a   : > { %1364 = vsyncadd (%p59_p9), [#allocation11], 4294966784  ;;  %s1587_s28 = scalar_lea.vmem [#allocation12], %s1024_s24  ;;  %p1029_p7 = scmp.ne.s32.totalorder %s1383_s18, 0 }
  0x3c   : > { %358 = sbr.rel (%p1029_p7) target bundleno = 210 (0xd2), region = 56 }
  0x41   : > { %v361_v0 = vld [vmem:[#allocation10 + $0x10] sm:$0xff]  ;;  %vm363_vm0 = vcmask 64512   ;;  %v359_v1 = vld [vmem:[#allocation10] sm:$0xff]  ;;  %v362_v5 = vld [vmem:[#allocation10 + $0x18] sm:$0xff]  ;;  %v453_v24 = vlaneseq  ;;  %vm436_vm5 = vcmask 7168  }
  0x42   : > { %v370_v2 = vsel %vm363_vm0, %v361_v0, 0.0  ;;  %v443_v3 = vmax.f32 %v361_v0, 1e-30  ;;  %v364_v4 = vsel %vm363_vm0, %v359_v1, 0.0  ;;  %v441_v6 = vmax.f32 %v359_v1, 1e-30 }
  0x43   : > { %371 = vadd.xlane.f32.xlu1 %v370_v2  ;;  %365 = vadd.xlane.f32.xlu0 %v364_v4  ;;  %v444_v7 = vmax.f32 %v362_v5, 1e-30  ;;  %v360_v8 = vld [vmem:[#allocation10 + $0x8] sm:$0xff]  ;;  %v373_v10 = vsel %vm363_vm0, %v362_v5, 0.0  ;;  %v454_v25 = vshrl.u32 %v453_v24, 7  ;;  %v456_v26 = vand.u32 127, %v453_v24 }
  0x44   : > { %1147 = vlog2.f32 %v443_v3  ;;  %v442_v9 = vmax.f32 %v360_v8, 1e-30  ;;  %v367_v11 = vsel %vm363_vm0, %v360_v8, 0.0 }
  0x45   : > { %1149 = vlog2.f32 %v444_v7  ;;  %v457_v27 = vsub.s32 %v454_v25, %v456_v26  ;;  %vm492_vm1 = vcmp.ge.s32.totalorder %v454_v25, %v456_v26 }
  0x46   : > { %1151 = vlog2.f32 %v442_v9 }
  0x47   : > { %1153 = vlog2.f32 %v441_v6  ;;  %v458_v28 = vcvt.s32.f32 %v457_v27 }
  0x49   : > { %v459_v29 = vmax.f32 %v458_v28, 0.0 }
  0x4a   : > { %v1148_v12 = vpop.eup %1147 }
  0x4b   : > { %v1150_v13 = vpop.eup %1149  ;;  %374 = vadd.xlane.f32.xlu1 %v373_v10  ;;  %368 = vadd.xlane.f32.xlu0 %v367_v11  ;;  %v450_v15 = vmul.f32 0.6931472, %v1148_v12 }
  0x4c   : > { %v1152_v14 = vpop.eup %1151  ;;  %v452_v18 = vmul.f32 0.6931472, %v1150_v13 }
  0x4d   : > { %v1154_v16 = vpop.eup %1153  ;;  %v448_v17 = vmul.f32 0.6931472, %v1152_v14  ;;  %v466_v22 = vrot.slane %v450_v15, 1 }
  0x4e   : > { %v446_v19 = vmul.f32 0.6931472, %v1154_v16  ;;  %v467_v23 = vrot.slane %v452_v18, 1 }
  0x4f   : > { %v465_v20 = vrot.slane %v448_v17, 1 }
  0x50   : > { %v464_v21 = vrot.slane %v446_v19, 1 }
  0x52   : > { %1051 = vpush %v464_v21 }
  0x53   : > { %1053 = vpush %v465_v20 }
  0x54   : > { %1055 = vpush %v466_v22 }
  0x55   : > { %1057 = vpush %v467_v23 }
  0x83   : > { %s1052_s10 = spop %1051 }
  0x84   : > { %s1054_s12 = spop %1053  ;;  %v469_v30 = vstv %s1052_s10 }
  0x85   : > { %s1056_s13 = spop %1055  ;;  %v472_v31 = vstv %s1054_s12  ;;  %v480_v34 = vmul.f32 %v469_v30, %v459_v29 }
  0x86   : > { %s1058_s22 = spop %1057  ;;  %v475_v32 = vstv %s1056_s13  ;;  %v481_v35 = vmul.f32 %v472_v31, %v459_v29 }
  0x87   : > { %v478_v33 = vstv %s1058_s22  ;;  %v482_v36 = vmul.f32 %v475_v32, %v459_v29  ;;  %v484_v38 = vmul.f32 1.442695, %v480_v34 }
  0x88   : > { %v483_v37 = vmul.f32 %v478_v33, %v459_v29  ;;  %v486_v39 = vmul.f32 1.442695, %v481_v35 }
  0x89   : > { %v488_v40 = vmul.f32 1.442695, %v482_v36  ;;  %1155 = vpow2.f32 %v484_v38 }
  0x8a   : > { %v490_v41 = vmul.f32 1.442695, %v483_v37  ;;  %1157 = vpow2.f32 %v486_v39 }
  0x8b   : > { %1159 = vpow2.f32 %v488_v40 }
  0x8c   : > { %1161 = vpow2.f32 %v490_v41 }
  0x8f   : > { %v1156_v42 = vpop.eup %1155 }
  0x90   : > { %v1158_v43 = vpop.eup %1157  ;;  %v493_v44 = vsel %vm492_vm1, %v1156_v42, 0.0 }
  0x91   : > { %v1160_v45 = vpop.eup %1159  ;;  %497 = vst.msk [vmem:[#allocation3] sm:$0xff] %vm363_vm0, %v493_v44  ;;  %v494_v46 = vsel %vm492_vm1, %v1158_v43, 0.0 }
  0x92   : > { %v1162_v47 = vpop.eup %1161  ;;  %498 = vst.msk [vmem:[#allocation3 + $0x8] sm:$0xff] %vm363_vm0, %v494_v46  ;;  %v495_v48 = vsel %vm492_vm1, %v1160_v45, 0.0 }
  0x93   : > { %499 = vst.msk [vmem:[#allocation3 + $0x10] sm:$0xff] %vm363_vm0, %v495_v48  ;;  %v496_v49 = vsel %vm492_vm1, %v1162_v47, 0.0 }
  0x94   : > { %500 = vst.msk [vmem:[#allocation3 + $0x18] sm:$0xff] %vm363_vm0, %v496_v49 }
  0xb6   : > { %v372_v50 = vpop.xlane.xlu1 %371  ;;  %v366_v51 = vpop.xlane.xlu0 %365 }
  0xb7   : > { %1163 = vrcp.f32 %v372_v50  ;;  %v417_v59 = vand.u32 2147483648, %v372_v50  ;;  %v415_v62 = vand.u32 2147483647, %v372_v50  ;;  %v387_v63 = vand.u32 2147483648, %v366_v51 }
  0xb8   : > { %1165 = vrcp.f32 %v366_v51  ;;  %v385_v1 = vand.u32 2147483647, %v366_v51  ;;  %vm411_vm4 = vweird.f32 %v372_v50  ;;  %vm381_vm7 = vweird.f32 %v366_v51 }
  0xb9   : > { %v418_v4 = vor.u32 1.1754944e-38, %v417_v59  ;;  %vm416_vm8 = vcmp.eq.f32.partialorder %v415_v62, 8.507059e+37  ;;  %v388_v8 = vor.u32 1.1754944e-38, %v387_v63 }
  0xba   : > { %vm386_vm10 = vcmp.eq.f32.partialorder %v385_v1, 8.507059e+37 }
  0xbd   : > { %v1164_v52 = vpop.eup %1163 }
  0xbe   : > { %v1166_v53 = vpop.eup %1165  ;;  %v407_v54 = vmul.f32 %v1164_v52, %v372_v50  ;;  %v375_v55 = vpop.xlane.xlu1 %374  ;;  %vm412_vm2 = vweird.f32 %v1164_v52 }
  0xbf   : > { %v369_v56 = vpop.xlane.xlu0 %368  ;;  %v377_v57 = vmul.f32 %v1166_v53, %v366_v51  ;;  %1167 = vrcp.f32 %v375_v55  ;;  %vm382_vm3 = vweird.f32 %v1166_v53  ;;  %vm413_vm6 = vmor %vm411_vm4, %vm412_vm2  ;;  %v432_v15 = vand.u32 2147483648, %v375_v55 }
  0xc0   : > { %v408_v58 = vsub.f32 1.0, %v407_v54  ;;  %1169 = vrcp.f32 %v369_v56  ;;  %vm383_vm9 = vmor %vm381_vm7, %vm382_vm3  ;;  %v430_v18 = vand.u32 2147483647, %v375_v55  ;;  %v402_v19 = vand.u32 2147483648, %v369_v56 }
  0xc1   : > { %v378_v60 = vsub.f32 1.0, %v377_v57  ;;  %v400_v21 = vand.u32 2147483647, %v369_v56  ;;  %vm426_vm13 = vweird.f32 %v375_v55  ;;  %v433_v23 = vor.u32 1.1754944e-38, %v432_v15 }
  0xc2   : > { %v409_v61 = vmul.f32 %v1164_v52, %v408_v58  ;;  %vm396_vm15 = vweird.f32 %v369_v56  ;;  %vm431_vm0 = vcmp.eq.f32.partialorder %v430_v18, 8.507059e+37  ;;  %v403_v26 = vor.u32 1.1754944e-38, %v402_v19 }
  0xc3   : > { %v379_v0 = vmul.f32 %v1166_v53, %v378_v60  ;;  %vm401_vm2 = vcmp.eq.f32.partialorder %v400_v21, 8.507059e+37 }
  0xc4   : > { %v410_v2 = vadd.f32 %v1164_v52, %v409_v61 }
  0xc5   : > { %v1168_v3 = vpop.eup %1167  ;;  %v380_v5 = vadd.f32 %v1166_v53, %v379_v0 }
  0xc6   : > { %v1170_v6 = vpop.eup %1169  ;;  %v414_v7 = vsel %vm413_vm6, %v1164_v52, %v410_v2  ;;  %v422_v9 = vmul.f32 %v1168_v3, %v375_v55  ;;  %vm427_vm11 = vweird.f32 %v1168_v3 }
  0xc7   : > { %v419_v10 = vsel %vm416_vm8, %v418_v4, %v414_v7  ;;  %v384_v11 = vsel %vm383_vm9, %v1166_v53, %v380_v5  ;;  %v392_v12 = vmul.f32 %v1170_v6, %v369_v56  ;;  %vm397_vm12 = vweird.f32 %v1170_v6  ;;  %vm428_vm14 = vmor %vm426_vm13, %vm427_vm11 }
  0xc8   : > { %439 = vst.msk [vmem:[#allocation2 + $0x10] sm:$0xff] %vm436_vm5, %v419_v10  ;;  %v389_v13 = vsel %vm386_vm10, %v388_v8, %v384_v11  ;;  %v423_v14 = vsub.f32 1.0, %v422_v9  ;;  %vm398_vm1 = vmor %vm396_vm15, %vm397_vm12 }
  0xc9   : > { %437 = vst.msk [vmem:[#allocation2] sm:$0xff] %vm436_vm5, %v389_v13  ;;  %v393_v16 = vsub.f32 1.0, %v392_v12 }
  0xca   : > { %v424_v17 = vmul.f32 %v1168_v3, %v423_v14 }
  0xcb   : > { %v394_v20 = vmul.f32 %v1170_v6, %v393_v16 }
  0xcc   : > { %v425_v22 = vadd.f32 %v1168_v3, %v424_v17 }
  0xcd   : > { %v395_v24 = vadd.f32 %v1170_v6, %v394_v20 }
  0xce   : > { %v429_v25 = vsel %vm428_vm14, %v1168_v3, %v425_v22 }
  0xcf   : > { %v434_v27 = vsel %vm431_vm0, %v433_v23, %v429_v25  ;;  %v399_v28 = vsel %vm398_vm1, %v1170_v6, %v395_v24 }
  0xd0   : > { %440 = vst.msk [vmem:[#allocation2 + $0x18] sm:$0xff] %vm436_vm5, %v434_v27  ;;  %v404_v29 = vsel %vm401_vm2, %v403_v26, %v399_v28 }
  0xd1   : > { %438 = vst.msk [vmem:[#allocation2 + $0x8] sm:$0xff] %vm436_vm5, %v404_v29 }
  0xd2 PF: > { %v515_v30 = vld [vmem:[#allocation2 + $0x10] sm:$0xff]  ;;  %v513_v31 = vld [vmem:[#allocation2] sm:$0xff]  ;;  %v1396_v32 = vmov 0   ;;  %vm541_vm3 = vcmask 261120   ;;  %v506_v37 = vld [vmem:[%s1575_s3 + $0x8] sm:$0xff]  ;;  %vm654_vm4 = vcmask 64512  }
  0xd3   : > { %1172 = vset.pattern.permute.xlu1 %v1396_v32  ;;  %1171 = vset.pattern.permute.xlu0 %v1396_v32  ;;  %v505_v35 = vld [vmem:[%s1575_s3] sm:$0xff]  ;;  %v507_v36 = vld [vmem:[%s1575_s3 + $0x10] sm:$0xff]  ;;  %v508_v38 = vld [vmem:[%s1575_s3 + $0x18] sm:$0xff]  ;;  %s1050_s6 = sshll.u32 %s1383_s18, 5  ;;  %s858_s18 = sshll.u32 %s1587_s28, 4  ;;  %s859_s18 = int_to_ptr.vmem [resolvable:$true] %s858_s18 }
  0xd4   : > { %529 = vperm.xlu0 %1171, %v515_v30   ;;  %519 = vperm.xlu1 %1172, %v513_v31   ;;  %v503_v39 = vld [vmem:[%s1568_s27 + $0x10] sm:$0xff]  ;;  %v501_v40 = vld [vmem:[%s1568_s27] sm:$0xff]  ;;  %v504_v45 = vld [vmem:[%s1568_s27 + $0x18] sm:$0xff]  ;;  %s857_s8 = scalar_lea.hbm %s1681_s4, %s1050_s6  ;;  %s844_s30 = scalar_lea.sflag [#allocation6], %s1564_s21 }
  0xd5   : > { %1030 = vmatpush.xpose.msk.msra.mxu0 %vm541_vm3, %v505_v35  ;;  %1034 = vmatpush.xpose.msk.msra.mxu2 %vm541_vm3, %v507_v36  ;;  %v502_v46 = vld [vmem:[%s1568_s27 + $0x8] sm:$0xff]  ;;  %v509_v51 = vld [vmem:[%s1581_s19] sm:$0xff]  ;;  %v511_v52 = vld [vmem:[%s1581_s19 + $0x10] sm:$0xff]  ;;  %s860_s14 = sshll.u32 %s857_s8, 4  ;;  %s1321_s27 = scalar_lea.hbm %s1681_s4, 64  ;;  %s861_s14 = int_to_ptr.hbm [resolvable:$true] %s860_s14 }
  0xd6   : > { %1032 = vmatpush.xpose.msk.msra.mxu1 %vm541_vm3, %v506_v37  ;;  %1036 = vmatpush.xpose.msk.msra.mxu3 %vm541_vm3, %v508_v38  ;;  %v510_v53 = vld [vmem:[%s1581_s19 + $0x8] sm:$0xff]  ;;  %v512_v54 = vld [vmem:[%s1581_s19 + $0x18] sm:$0xff]  ;;  %v735_v55 = vld [vmem:[#allocation10] sm:$0xff]  ;;  %s1315_s5 = sshra.s32 %s861_s14, 4  ;;  %s1316_s5 = int_to_ptr.hbm [resolvable:$true] %s1315_s5 }
  0xd7   : > { %v516_v33 = vld [vmem:[#allocation2 + $0x18] sm:$0xff]  ;;  %v646_v56 = vld [vmem:[#allocation3] sm:$0xff]  ;;  %v648_v61 = vld [vmem:[#allocation3 + $0x10] sm:$0xff]  ;;  %s1317_s11 = scalar_lea.hbm %s1316_s5, 32  ;;  %p1322_p11 = scmp.lt.s32.totalorder %s1316_s5, %s1681_s4 }
  0xd8   : > { %v514_v34 = vld [vmem:[#allocation2 + $0x8] sm:$0xff]  ;;  %v737_v62 = vld [vmem:[#allocation10 + $0x10] sm:$0xff]  ;;  %v649_v9 = vld [vmem:[#allocation3 + $0x18] sm:$0xff]  ;;  %p1318_p8 = scmp.ne.s32.totalorder %s1316_s5, %s1317_s11  ;;  %p1323_p12 = scmp.lt.s32.totalorder %s1321_s27, %s1317_s11 }
  0xd9   : > { %761 = vmatpush.msrb.mxu0 %v509_v51  ;;  %807 = vmatpush.msrb.mxu2 %v511_v52  ;;  %v647_v0 = vld [vmem:[#allocation3 + $0x8] sm:$0xff]  ;;  %v738_v10 = vld [vmem:[#allocation10 + $0x18] sm:$0xff] }
  0xda   : > { %784 = vmatpush.msrb.mxu1 %v510_v53  ;;  %830 = vmatpush.msrb.mxu3 %v512_v54  ;;  %v736_v1 = vld [vmem:[#allocation10 + $0x8] sm:$0xff]  ;;  %p1319_p9 = pnand %p1318_p8, %p1515_p0  ;;  %p1324_p13 = por %p1323_p12, %p1322_p11 }
  0xdc   : > { %534 = vperm.xlu0 %1171, %v516_v33   ;;  %524 = vperm.xlu1 %1172, %v514_v34   ;;  %p1320_p10 = pneg %p1319_p9 }
  0xde   : > { %p1325_p3 = pnand %p1324_p13, %p1320_p10 }
 0x146   : > { %v530_v41 = vpop.permute.xlu0 %529  ;;  %v520_v42 = vpop.permute.xlu1 %519 }
 0x147   : > { %v539_v43 = vmul.f32 %v530_v41, %v503_v39  ;;  %v537_v44 = vmul.f32 %v520_v42, %v501_v40 }
 0x149   : > { %1031 = vmatmul.msk.f32.vlgmr.msra.gmra.mxu0 %vm541_vm3, %v537_v44  ;;  %1035 = vmatmul.msk.f32.vlgmr.msra.gmra.mxu2 %vm541_vm3, %v539_v43 }
 0x14e   : > { %v535_v47 = vpop.permute.xlu0 %534  ;;  %v525_v48 = vpop.permute.xlu1 %524 }
 0x14f   : > { %v540_v49 = vmul.f32 %v535_v47, %v504_v45  ;;  %v538_v50 = vmul.f32 %v525_v48, %v502_v46 }
 0x151   : > { %1033 = vmatmul.msk.f32.vlgmr.msra.gmra.mxu1 %vm541_vm3, %v538_v50  ;;  %1037 = vmatmul.msk.f32.vlgmr.msra.gmra.mxu3 %vm541_vm3, %v540_v49 }
 0x1c6   : > { %v565_v57 = vpop.f32.mrf.mxu0 }
 0x1c7   : > { %v739_v58 = vmul.f32 %v735_v55, %v565_v57  ;;  %v650_v59 = vmul.f32 %v646_v56, %v565_v57 }
 0x1c9   : > { %v655_v60 = vsel %vm654_vm4, %v650_v59, 0.0  ;;  %1038 = vmatmul.msk.f32.vlgmr.msrb.gmra.mxu0 %vm654_vm4, %v739_v58 }
 0x1ca   : > { %656 = vadd.xlane.f32.xlu2 %v655_v60 }
 0x1cc   : > { %v617_v63 = vpop.f32.mrf.mxu2 }
 0x1cd   : > { %v652_v2 = vmul.f32 %v648_v61, %v617_v63  ;;  %v741_v3 = vmul.f32 %v737_v62, %v617_v63 }
 0x1ce   : > { %v591_v4 = vpop.f32.mrf.mxu1 }
 0x1cf   : > { %v651_v5 = vmul.f32 %v647_v0, %v591_v4  ;;  %v740_v6 = vmul.f32 %v736_v1, %v591_v4  ;;  %1040 = vmatmul.msk.f32.vlgmr.msrb.gmra.mxu2 %vm654_vm4, %v741_v3  ;;  %v661_v7 = vsel %vm654_vm4, %v652_v2, 0.0 }
 0x1d0   : > { %662 = vadd.xlane.f32.xlu0 %v661_v7 }
 0x1d1   : > { %1039 = vmatmul.msk.f32.vlgmr.msrb.gmra.mxu1 %vm654_vm4, %v740_v6  ;;  %v658_v8 = vsel %vm654_vm4, %v651_v5, 0.0 }
 0x1d2   : > { %659 = vadd.xlane.f32.xlu2 %v658_v8 }
 0x1d4   : > { %v643_v11 = vpop.f32.mrf.mxu3 }
 0x1d5   : > { %v653_v12 = vmul.f32 %v649_v9, %v643_v11  ;;  %v742_v13 = vmul.f32 %v738_v10, %v643_v11 }
 0x1d7   : > { %1041 = vmatmul.msk.f32.vlgmr.msrb.gmra.mxu3 %vm654_vm4, %v742_v13  ;;  %v664_v14 = vsel %vm654_vm4, %v653_v12, 0.0 }
 0x1d8   : > { %665 = vadd.xlane.f32.xlu1 %v664_v14 }
 0x23d   : > { %v657_v15 = vpop.xlane.xlu2 %656 }
 0x23e   : > { %v667_v16 = vand.u32 2147483647, %v657_v15 }
 0x240   : > { %v671_v17 = vmax.f32 %v667_v16, 1.0 }
 0x242   : > { %1173 = vrcp.f32 %v671_v17  ;;  %v686_v29 = vand.u32 2147483648, %v671_v17  ;;  %vm680_vm5 = vweird.f32 %v671_v17  ;;  %v684_v31 = vand.u32 2147483647, %v671_v17 }
 0x243   : > { %v663_v18 = vpop.xlane.xlu0 %662 }
 0x244   : > { %v669_v19 = vand.u32 2147483647, %v663_v18  ;;  %v687_v37 = vor.u32 1.1754944e-38, %v686_v29  ;;  %vm685_vm8 = vcmp.eq.f32.partialorder %v684_v31, 8.507059e+37 }
 0x245   : > { %v660_v20 = vpop.xlane.xlu2 %659 }
 0x246   : > { %v673_v21 = vmax.f32 %v669_v19, 1.0  ;;  %v668_v22 = vand.u32 2147483647, %v660_v20  ;;  %v763_v42 = vpop.f32.mrf.mxu0 }
 0x248   : > { %v1174_v23 = vpop.eup %1173  ;;  %1175 = vrcp.f32 %v673_v21  ;;  %v672_v24 = vmax.f32 %v668_v22, 1.0  ;;  %v714_v43 = vand.u32 2147483647, %v673_v21  ;;  %v716_v44 = vand.u32 2147483648, %v673_v21 }
 0x249   : > { %v676_v25 = vmul.f32 %v1174_v23, %v671_v17  ;;  %vm681_vm6 = vweird.f32 %v1174_v23  ;;  %vm710_vm10 = vweird.f32 %v673_v21 }
 0x24a   : > { %1177 = vrcp.f32 %v672_v24  ;;  %vm682_vm7 = vmor %vm680_vm5, %vm681_vm6  ;;  %v701_v48 = vand.u32 2147483648, %v672_v24  ;;  %v699_v50 = vand.u32 2147483647, %v672_v24  ;;  %vm695_vm12 = vweird.f32 %v672_v24 }
 0x24b   : > { %v666_v26 = vpop.xlane.xlu1 %665  ;;  %v677_v27 = vsub.f32 1.0, %v676_v25  ;;  %v717_v53 = vor.u32 1.1754944e-38, %v716_v44  ;;  %vm715_vm14 = vcmp.eq.f32.partialorder %v714_v43, 8.507059e+37 }
 0x24c   : > { %v670_v28 = vand.u32 2147483647, %v666_v26  ;;  %v702_v57 = vor.u32 1.1754944e-38, %v701_v48  ;;  %vm700_vm0 = vcmp.eq.f32.partialorder %v699_v50, 8.507059e+37 }
 0x24d   : > { %v678_v30 = vmul.f32 %v1174_v23, %v677_v27 }
 0x24e   : > { %v1176_v32 = vpop.eup %1175  ;;  %v674_v33 = vmax.f32 %v670_v28, 1.0  ;;  %v786_v0 = vpop.f32.mrf.mxu1 }
 0x24f   : > { %v679_v34 = vadd.f32 %v1174_v23, %v678_v30  ;;  %v706_v35 = vmul.f32 %v1176_v32, %v673_v21  ;;  %vm711_vm9 = vweird.f32 %v1176_v32 }
 0x250   : > { %v1178_v36 = vpop.eup %1177  ;;  %1179 = vrcp.f32 %v674_v33  ;;  %vm712_vm13 = vmor %vm710_vm10, %vm711_vm9  ;;  %v731_v1 = vand.u32 2147483648, %v674_v33  ;;  %v729_v4 = vand.u32 2147483647, %v674_v33  ;;  %vm725_vm2 = vweird.f32 %v674_v33 }
 0x251   : > { %v683_v38 = vsel %vm682_vm7, %v1174_v23, %v679_v34  ;;  %v691_v39 = vmul.f32 %v1178_v36, %v672_v24  ;;  %v707_v40 = vsub.f32 1.0, %v706_v35  ;;  %vm696_vm11 = vweird.f32 %v1178_v36 }
 0x252   : > { %v688_v41 = vsel %vm685_vm8, %v687_v37, %v683_v38  ;;  %vm697_vm15 = vmor %vm695_vm12, %vm696_vm11  ;;  %v809_v59 = vpop.f32.mrf.mxu2  ;;  %v732_v6 = vor.u32 1.1754944e-38, %v731_v1  ;;  %vm730_vm5 = vcmp.eq.f32.partialorder %v729_v4, 8.507059e+37 }
 0x253   : > { %v835_v45 = vmul.f32 %v763_v42, %v688_v41  ;;  %v692_v46 = vsub.f32 1.0, %v691_v39  ;;  %v708_v47 = vmul.f32 %v1176_v32, %v707_v40 }
 0x255   : > { %839 = vst.msk [vmem:[%s1587_s28] sm:$0xff] %vm541_vm3, %v835_v45  ;;  %v693_v49 = vmul.f32 %v1178_v36, %v692_v46  ;;  %v709_v51 = vadd.f32 %v1176_v32, %v708_v47 }
 0x256   : > { %v1180_v52 = vpop.eup %1179 }
 0x257   : > { %v694_v54 = vadd.f32 %v1178_v36, %v693_v49  ;;  %v713_v55 = vsel %vm712_vm13, %v1176_v32, %v709_v51  ;;  %v721_v56 = vmul.f32 %v1180_v52, %v674_v33  ;;  %vm726_vm1 = vweird.f32 %v1180_v52 }
 0x258   : > { %v718_v58 = vsel %vm715_vm14, %v717_v53, %v713_v55  ;;  %vm727_vm4 = vmor %vm725_vm2, %vm726_vm1 }
 0x259   : > { %v698_v60 = vsel %vm697_vm15, %v1178_v36, %v694_v54  ;;  %v837_v61 = vmul.f32 %v809_v59, %v718_v58  ;;  %v722_v62 = vsub.f32 1.0, %v721_v56 }
 0x25a   : > { %v703_v63 = vsel %vm700_vm0, %v702_v57, %v698_v60  ;;  %v832_v9 = vpop.f32.mrf.mxu3 }
 0x25b   : > { %v836_v2 = vmul.f32 %v786_v0, %v703_v63  ;;  %841 = vst.msk [vmem:[%s1587_s28 + $0x10] sm:$0xff] %vm541_vm3, %v837_v61  ;;  %v723_v3 = vmul.f32 %v1180_v52, %v722_v62 }
 0x25d   : > { %840 = vst.msk [vmem:[%s1587_s28 + $0x8] sm:$0xff] %vm541_vm3, %v836_v2  ;;  %v724_v5 = vadd.f32 %v1180_v52, %v723_v3 }
 0x25f   : > { %v728_v7 = vsel %vm727_vm4, %v1180_v52, %v724_v5 }
 0x260   : > { %v733_v8 = vsel %vm730_vm5, %v732_v6, %v728_v7 }
 0x261   : > { %v838_v10 = vmul.f32 %v832_v9, %v733_v8 }
 0x263   : > { %842 = vst.msk [vmem:[%s1587_s28 + $0x18] sm:$0xff] %vm541_vm3, %v838_v10 }
 0x264   : > { %1328 = shalt.err (!%p1325_p3)
}
 0x265   : > { %s1397_s21 = smov 128   ;;  %s1398_s3 = smov 8  }
 0x266   : > { %1069 = dma.vmem_to_hbm [thread:$0]  (%p1515_p0), %s859_s18, 512, %s861_s14, %s844_s30, %s1397_s21, %s1397_s21, %s1398_s3  }
 0x267 PF: > { %s875_s19 = sand.u32 1, %s1371_s15   ;;  %p1086_p5 = pnand %p1013_p4, %p1519_p2 }
 0x268   : > { %s876_s28 = scalar_lea.sflag [#allocation6], %s875_s19 }
 0x269   : > { %p1087_p1 = pneg %p1086_p5 }
 0x26b   : > { %1366 = dma.done.wait (%p1087_p1), %s876_s28, 512  }
 0x26c   : > { %1368 = vsyncadd (%p1087_p1), %s876_s28, 4294966784  ;;  %s24_s20 = sadd.s32 1, %s1391_s20   ;;  %s1705_s18 = sld [smem:[#allocation17_spill]] }
 0x26d   : > { %p21_p6 = scmp.ge.s32.totalorder %s24_s20, 4   ;;  %s1706_s19 = sld [smem:[#allocation18_spill]] }
 0x26e   : > { %s1707_s15 = smov %s1375_s16  ;;  %s1708_s16 = smov %s1379_s17 }
 0x26f   : > { %s1709_s17 = smov %s1473_s26  ;;  %23 = sbr.rel (!%p21_p6) target bundleno = 13 (0xd), region = 114 }
 0x274   :  { %882 = vsyncpa [#allocation5], 1 }
 0x275   :  { %884 = vsyncpa [#allocation5 + $0x1], 1 }
 0x276   :  { %885 = vsyncpa [#allocation8], 1 }
 0x277   :  { %887 = vsyncpa [#allocation8 + $0x1], 1 }
 0x278   :  { %888 = vsyncpa [#allocation11], 1 }
 0x279   :  { %889 = vsyncpa [#allocation6], 1 }
 0x27a   :  { %891 = vsyncpa [#allocation6 + $0x1], 1 }

</bundles_post_ra>
